<compile_context>
chip_gen: v6e
topology: v6e:2x2x1
jax: 0.10.0
libtpu: 0.0.40
codegen_flags: <defaults>
</compile_context>

<pallas_src>
import jax
import jax.numpy as jnp
from jax.experimental import pallas as pl
from jax.experimental.pallas import tpu as pltpu


def _patch_embed_kernel(p_ref, w_ref, pe_ref, o_ref):
    # p_ref  : (TB, N+1, Kp)  streamed patches; row 0 per batch is zeros (cls slot)
    # w_ref  : (Kp, E)        projection weight, resident across grid
    # pe_ref : (N+1, E)       f32: row 0 = cls+pos[0]; rows 1: = pos[1:]+bias
    # o_ref  : (TB, N+1, E)   full output block
    tb = p_ref.shape[0]
    w = w_ref[...]
    pe = pe_ref[...]
    # Per-batch 2-D matmuls: avoids any (TB,N,K)->(TB*N,K) relayout when N+1 is
    # not a sublane multiple, and each store is a full aligned (N+1, E) slab.
    for b in range(tb):
        acc = jnp.dot(p_ref[b], w, preferred_element_type=jnp.float32)
        o_ref[b] = (acc + pe).astype(o_ref.dtype)


def _vmem_capacity_bytes():
    try:
        return int(pltpu.get_tpu_info().vmem_capacity_bytes)
    except Exception:
        return 64 << 20  # conservative fallback (v7x-sized)


def _footprint_bytes(tb, n1, kp, e, in_isize, out_isize):
    # Dtype-aware per-step VMEM footprint:
    #   streamed patches + output blocks are double-buffered by the pipeline,
    #   weight / bias block are single-buffered (pl.Buffered(1)).
    return (2 * tb * n1 * kp * in_isize          # patches (x2 buffers)
            + 2 * tb * n1 * e * out_isize        # output  (x2 buffers)
            + kp * e * in_isize                  # resident weight
            + n1 * e * 4)                        # resident f32 bias block


def _choose_block_batches(B, n1, kp, e, in_isize, out_isize, vmem_capacity):
    """Pick TB (batches per grid step): fill the MXU / DMA pipeline without
    blowing VMEM, and keep >= 2 grid steps when B allows (v7x megacore, and
    deeper pipelining on single-core parts)."""
    budget = int(vmem_capacity * 0.7)
    target_rows = 512 if vmem_capacity <= (64 << 20) else 2048
    best = 1
    for tb in range(1, B + 1):
        if B % tb != 0:
            continue
        if _footprint_bytes(tb, n1, kp, e, in_isize, out_isize) > budget:
            break
        best = tb
        if tb * n1 >= target_rows:
            break
    while best > 1 and B // best < 2:
        cand = best - 1
        while cand > 1 and B % cand != 0:
            cand -= 1
        best = cand
    return best


def patch_embedding_forward(x, conv_w, conv_b, pos_embed, cls_token,
                            patch_size, *, compute_dtype=jnp.bfloat16):
    """Pallas implementation of PatchEmbedding.forward.

    x         : (B, C, H, W)   NCHW, like the PyTorch module
    conv_w    : (E, C, ph, pw)
    conv_b    : (E,)
    pos_embed : (1, N+1, E)
    cls_token : (1, 1, E)
    compute_dtype : dtype for the streamed patches / weight (default bf16:
        full MXU rate on every TPU generation + half the streaming bytes);
        accumulation stays f32.
    returns   : (B, N+1, E) in x.dtype
    """
    B, C, H, W = x.shape
    ph, pw = patch_size
    E = conv_w.shape[0]
    nh, nw = H // ph, W // pw
    N = nh * nw
    N1 = N + 1
    K = C * ph * pw
    Kp = ((K + 127) // 128) * 128          # lane-pad the contraction dim
    out_dtype = jnp.dtype(x.dtype)
    cdt = jnp.dtype(compute_dtype)

    # --- glue: patchify (matches Conv2d with kernel=stride=patch_size),
    #     prepend a zero "cls" patch row, zero-pad K -> Kp.  Numerically exact.
    patches = x.reshape(B, C, nh, ph, nw, pw)
    patches = patches.transpose(0, 2, 4, 1, 3, 5)              # (B, nh, nw, C, ph, pw)
    patches = patches.reshape(B, N, K).astype(cdt)             # (B, N, K)
    patches = jnp.concatenate(
        [jnp.zeros((B, 1, K), cdt), patches], axis=1)          # (B, N+1, K)
    if Kp != K:
        patches = jnp.pad(patches, ((0, 0), (0, 0), (0, Kp - K)))

    w_mat = conv_w.reshape(E, K).T.astype(cdt)                 # (K, E)
    if Kp != K:
        w_mat = jnp.pad(w_mat, ((0, Kp - K), (0, 0)))          # (Kp, E)

    # Fused (N+1, E) bias block: row 0 = cls_token + pos_embed[0],
    # rows 1: = pos_embed[1:] + conv bias.  Kept in f32.
    pe_full = jnp.concatenate(
        [cls_token[0, 0:1, :] + pos_embed[0, 0:1, :],
         pos_embed[0, 1:, :] + conv_b[None, :]], axis=0).astype(jnp.float32)

    vmem_capacity = _vmem_capacity_bytes()
    TB = _choose_block_batches(B, N1, Kp, E, cdt.itemsize, out_dtype.itemsize,
                               vmem_capacity)
    footprint = _footprint_bytes(TB, N1, Kp, E, cdt.itemsize, out_dtype.itemsize)
    vmem_limit = int(min(max(footprint * 2, 32 << 20),
                         int(vmem_capacity * 0.9)))

    grid_spec = pltpu.PrefetchScalarGridSpec(
        num_scalar_prefetch=0,
        grid=(B // TB,),
        in_specs=[
            # streamed patches (double-buffered by default)
            pl.BlockSpec((TB, N1, Kp), lambda g: (g, 0, 0)),
            # resident operands: block never changes -> single buffer
            pl.BlockSpec((Kp, E), lambda g: (0, 0),
                         pipeline_mode=pl.Buffered(1)),
            pl.BlockSpec((N1, E), lambda g: (0, 0),
                         pipeline_mode=pl.Buffered(1)),
        ],
        out_specs=pl.BlockSpec((TB, N1, E), lambda g: (g, 0, 0)),
    )

    cost = pl.CostEstimate(
        flops=2 * B * N1 * Kp * E,
        transcendentals=0,
        bytes_accessed=(B * N1 * Kp * cdt.itemsize
                        + Kp * E * cdt.itemsize
                        + N1 * E * 4
                        + B * N1 * E * out_dtype.itemsize),
    )

    return pl.pallas_call(
        _patch_embed_kernel,
        out_shape=jax.ShapeDtypeStruct((B, N1, E), out_dtype),
        grid_spec=grid_spec,
        compiler_params=pltpu.CompilerParams(
            dimension_semantics=("parallel",),
            vmem_limit_bytes=vmem_limit,
            allow_input_fusion=[True, False, False]),
        cost_estimate=cost,
    )(patches, w_mat, pe_full)


def _reference_forward(x, conv_w, conv_b, pos_embed, cls_token, patch_size):
    """Pure-JAX (f32) reference matching the PyTorch module's forward."""
    B, C, H, W = x.shape
    ph, pw = patch_size
    E = conv_w.shape[0]
    y = jax.lax.conv_general_dilated(
        x, conv_w, window_strides=(ph, pw), padding="VALID",
        dimension_numbers=("NCHW", "OIHW", "NCHW"))
    y = y + conv_b[None, :, None, None]
    y = y.reshape(B, E, -1).transpose(0, 2, 1)               # (B, N, E)
    cls = jnp.broadcast_to(cls_token, (B, 1, E))
    y = jnp.concatenate([cls, y], axis=1)
    return y + pos_embed


if __name__ == "__main__":
    # Small shapes consistent with the module.
    B, C = 2, 4
    img_size = (16, 16)
    patch_size = (4, 4)
    embed_dim = 32
    N = (img_size[0] // patch_size[0]) * (img_size[1] // patch_size[1])

    key = jax.random.PRNGKey(0)
    kx, kw, kb, kp, kc = jax.random.split(key, 5)

    x = jax.random.normal(kx, (B, C, img_size[0], img_size[1]), jnp.float32)
    conv_w = jax.random.normal(kw, (embed_dim, C, patch_size[0], patch_size[1]),
                               jnp.float32) * 0.05
    conv_b = jax.random.normal(kb, (embed_dim,), jnp.float32) * 0.05
    # PyTorch inits these to zeros; use small random values so the add paths
    # (pos embed, cls token) are actually exercised.
    pos_embed = jax.random.normal(kp, (1, N + 1, embed_dim), jnp.float32) * 0.02
    cls_token = jax.random.normal(kc, (1, 1, embed_dim), jnp.float32) * 0.02

    out = patch_embedding_forward(x, conv_w, conv_b, pos_embed, cls_token,
                                  patch_size)
    out = jax.block_until_ready(out)

    ref = _reference_forward(x, conv_w, conv_b, pos_embed, cls_token, patch_size)
    assert out.shape == (B, N + 1, embed_dim), out.shape
    # bf16 streamed operands (f32 accumulation) -> loosened tolerance.
    assert jnp.allclose(out, ref, atol=2e-2, rtol=2e-2), "mismatch vs reference"

    print("KERNEL_OK")
</pallas_src>

<mosaic_0001>
module attributes {stable_mosaic.version = 11 : i64} {
  func.func @_patch_embed_kernel(%arg0: i32, %arg1: memref<1x17x128xbf16, #tpu.memory_space<vmem>>, %arg2: memref<128x32xbf16, #tpu.memory_space<vmem>>, %arg3: memref<17x32xf32, #tpu.memory_space<vmem>>, %arg4: memref<1x17x32xf32, #tpu.memory_space<vmem>>) attributes {dimension_semantics = [#tpu.dimension_semantics<parallel>], iteration_bounds = array<i64: 2>, scalar_prefetch = 0 : i64, scratch_operands = 0 : i64, tpu.core_type = #tpu.core_type<tc>, window_params = [{transform_indices = @transform_0, window_bounds = array<i64: 1, 17, 128>}, {pipeline_mode = #tpu.pipeline_mode<synchronous>, transform_indices = @transform_1, window_bounds = array<i64: 128, 32>}, {pipeline_mode = #tpu.pipeline_mode<synchronous>, transform_indices = @transform_2, window_bounds = array<i64: 17, 32>}, {transform_indices = @transform_3, window_bounds = array<i64: 1, 17, 32>}]} {
    %c0 = arith.constant 0 : index
    %c0_0 = arith.constant 0 : index
    %0 = vector.load %arg2[%c0, %c0_0] : memref<128x32xbf16, #tpu.memory_space<vmem>>, vector<128x32xbf16>
    %c0_1 = arith.constant 0 : index
    %c0_2 = arith.constant 0 : index
    %1 = vector.load %arg3[%c0_1, %c0_2] : memref<17x32xf32, #tpu.memory_space<vmem>>, vector<17x32xf32>
    %c0_3 = arith.constant 0 : index
    %c0_4 = arith.constant 0 : index
    %c0_5 = arith.constant 0 : index
    %2 = vector.load %arg1[%c0_3, %c0_4, %c0_5] : memref<1x17x128xbf16, #tpu.memory_space<vmem>>, vector<1x17x128xbf16>
    %3 = vector.shape_cast %2 : vector<1x17x128xbf16> to vector<17x128xbf16>
    %cst = arith.constant dense<0.000000e+00> : vector<17x32xf32>
    %4 = tpu.matmul %3, %0, %cst {dimension_numbers = #tpu.dot_dimension_numbers<[1], [0], [0], [1], [0, 0, 1, 1], [], []>} : vector<17x128xbf16>, vector<128x32xbf16>, vector<17x32xf32> -> vector<17x32xf32>
    %5 = arith.addf %4, %1 : vector<17x32xf32>
    %c0_6 = arith.constant 0 : index
    %c0_7 = arith.constant 0 : index
    %c0_8 = arith.constant 0 : index
    %6 = vector.load %arg4[%c0_6, %c0_7, %c0_8] : memref<1x17x32xf32, #tpu.memory_space<vmem>>, vector<1x17x32xf32>
    %7 = vector.shape_cast %6 : vector<1x17x32xf32> to vector<17x32xf32>
    %8 = vector.shape_cast %5 : vector<17x32xf32> to vector<1x17x32xf32>
    tpu.vector_store %arg4[%c0_6, %c0_7, %c0_8], %8 {strides = array<i32>} : memref<1x17x32xf32, #tpu.memory_space<vmem>>, vector<1x17x32xf32>,
    return
  }
  func.func @transform_0(%arg0: i32) -> (i32, i32, i32) {
    %c0_i32 = arith.constant 0 : i32
    %c0_i32_0 = arith.constant 0 : i32
    %c0_i32_1 = arith.constant 0 : i32
    return %arg0, %c0_i32, %c0_i32_0 : i32, i32, i32
  }
  func.func @transform_1(%arg0: i32) -> (i32, i32) {
    %c0_i32 = arith.constant 0 : i32
    %c0_i32_0 = arith.constant 0 : i32
    %c0_i32_1 = arith.constant 0 : i32
    return %c0_i32, %c0_i32_0 : i32, i32
  }
  func.func @transform_2(%arg0: i32) -> (i32, i32) {
    %c0_i32 = arith.constant 0 : i32
    %c0_i32_0 = arith.constant 0 : i32
    %c0_i32_1 = arith.constant 0 : i32
    return %c0_i32, %c0_i32_0 : i32, i32
  }
  func.func @transform_3(%arg0: i32) -> (i32, i32, i32) {
    %c0_i32 = arith.constant 0 : i32
    %c0_i32_0 = arith.constant 0 : i32
    %c0_i32_1 = arith.constant 0 : i32
    return %arg0, %c0_i32, %c0_i32_0 : i32, i32, i32
  }
}

</mosaic_0001>

<bundles_post_ra>
// kernel: tpu_custom_call.1
= control target key start
LH: loop header
LB: loop body
LE: loop exit
PB: predicated region body
PF: predicated region fallthrough
CT: control target
= control target key end

     0   :  { %s457_s12 = smov 0   ;;  %s511_s0 = inlined_call_operand.vmem [shape: bf16[2,17,128], index: 0, kind: input, shape index: {}]   ;;  %s512_s1 = inlined_call_operand.vmem [shape: bf16[128,32], index: 1, kind: input, shape index: {}]   ;;  %s513_s2 = inlined_call_operand.vmem [shape: f32[17,32], index: 2, kind: input, shape index: {}]   ;;  %s514_s3 = inlined_call_operand.vmem [shape: f32[2,17,32], index: 3, kind: output, shape index: {}]  }
   0x1 LB: > { %s360_s13 = sadd.s32 4294967295, %s435_s12   ;;  %p364_p0 = scmp.ge.s32.totalorder %s435_s12, 1  ;;  %s435_s12 = sphi %s457_s12, %s13_s12  }
   0x2   : > { %p137_p1 = scmp.lt.s32.totalorder %s435_s12, 3 }
   0x4   : > { %p138_p2 = pnand %p364_p0, %p137_p1 }
   0x5   : > { %p161_p3 = scmp.lt.s32.totalorder (!%p138_p2), %s360_s13, 1 }
   0x6   : > { %141 = sbr.rel (%p138_p2) target bundleno = 246 (0xf6), region = 32 }
   0xb   : > { %v419_v0 = vld [vmem:[%s512_s1 + $0x38] sm:$0xff]   ;;  %v420_v1 = vld [vmem:[%s512_s1 + $0x30] sm:$0xff]   ;;  %s516_s13 = smov (!%p161_p3, %s360_s13), 1  ;;  %v421_v2 = vld [vmem:[%s512_s1 + $0x28] sm:$0xff]   ;;  %vm303_vm0 = vcmask 253952   ;;  %vm300_vm1 = vcmask 261120  }
   0xc   : > { %389 = vmatprep.subr.bf16.mxu0 %v419_v0  ;;  %s409_s20 = smul.u32 12, %s516_s13  ;;  %v422_v3 = vld [vmem:[%s512_s1 + $0x20] sm:$0xff]   ;;  %v423_v5 = vld [vmem:[%s512_s1 + $0x18] sm:$0xff]   ;;  %v424_v6 = vld [vmem:[%s512_s1 + $0x10] sm:$0xff]  }
   0xd   : > { %390 = vmatpush3.bf16.msra.mxu0 %v419_v0  ;;  %v425_v7 = vld [vmem:[%s512_s1 + $0x8] sm:$0xff]   ;;  %v426_v8 = vld [vmem:[%s512_s1] sm:$0xff]   ;;  %s410_s7 = smul.u32 24, %s516_s13  ;;  %v190_v10 = vld [vmem:[%s513_s2 + $0x10] sm:$0x1] }
   0xe   : > { %391 = vmatprep.subr.bf16.mxu0 %v420_v1  ;;  %s165_s23 = scalar_lea.vmem %s511_s0, %s409_s20  ;;  %v188_v12 = vld [vmem:[%s513_s2] sm:$0xff]  ;;  %v189_v17 = vld [vmem:[%s513_s2 + $0x8] sm:$0xff] }
   0xf   : > { %v427_v4 = vld [vmem:[%s165_s23] sm:$0xff]   ;;  %v428_v9 = vld [vmem:[%s165_s23 + $0x8] ss:$0 sps:$4 sm:$0x11]   ;;  %s170_s14 = scalar_lea.vmem %s514_s3, %s410_s7 }
  0x10   : > { %405 = vmatprep.mubr.bf16.mxu0 %v427_v4 }
  0x11   : > { %392 = vmatpush3.bf16.msra.mxu0 %v420_v1 }
  0x12   : > { %393 = vmatprep.subr.bf16.mxu0 %v421_v2 }
  0x15   : > { %394 = vmatpush3.bf16.msra.mxu0 %v421_v2 }
  0x16   : > { %395 = vmatprep.subr.bf16.mxu0 %v422_v3 }
  0x19   : > { %396 = vmatpush3.bf16.msra.mxu0 %v422_v3 }
  0x1a   : > { %397 = vmatprep.subr.bf16.mxu0 %v423_v5 }
  0x1d   : > { %398 = vmatpush3.bf16.msra.mxu0 %v423_v5 }
  0x1e   : > { %399 = vmatprep.subr.bf16.mxu0 %v424_v6 }
  0x21   : > { %400 = vmatpush3.bf16.msra.mxu0 %v424_v6 }
  0x22   : > { %401 = vmatprep.subr.bf16.mxu0 %v425_v7 }
  0x25   : > { %402 = vmatpush3.bf16.msra.mxu0 %v425_v7 }
  0x26   : > { %403 = vmatprep.subr.bf16.mxu0 %v426_v8 }
  0x29   : > { %404 = vmatpush3.bf16.msra.mxu0 %v426_v8 }
  0x2c   : > { %406 = vmatmul.mubr.bf16.vlgmr.msra.gmra.mxu0 %v428_v9 }
  0xec   : > { %v407_v11 = vpop.f32.mrf.mxu0 }
  0xed   : > { %v295_v13 = vadd.f32 %v407_v11, %v190_v10 }
  0xee   : > { %v286_v14 = vpop.f32.mrf.mxu0 }
  0xef   : > { %304 = vst.msk [vmem:[%s170_s14 + $0x10] sm:$0x1] %vm303_vm0, %v295_v13  ;;  %v287_v15 = vadd.f32 %v286_v14, %v188_v12 }
  0xf0   : > { %v408_v16 = vpop.f32.mrf.mxu0 }
  0xf1   : > { %301 = vst.msk [vmem:[%s170_s14] sm:$0xff] %vm300_vm1, %v287_v15 }
  0xf2   : > { %v289_v18 = vpop.f32.mrf.mxu0 }
  0xf3   : > { %v290_v19 = vadd.f32 %v289_v18, %v189_v17 }
  0xf5   : > { %302 = vst.msk [vmem:[%s170_s14 + $0x8] sm:$0xff] %vm300_vm1, %v290_v19 }
  0xf6 PF: > { %s13_s12 = sadd.s32 1, %s435_s12  }
  0xf7   : > { %p10_p4 = scmp.ge.s32.totalorder %s13_s12, 4  }
  0xf9   :  { %12 = sbr.rel (!%p10_p4) target bundleno = 1 (0x1), region = 62 }

</bundles_post_ra>
